<compile_context>
chip_gen: v7x
topology: tpu7x:2x2x1
jax: 0.10.0
libtpu: 0.0.40
codegen_flags: <defaults>
</compile_context>

<pallas_src>
import functools

import jax
import jax.numpy as jnp
from jax.experimental import pallas as pl
from jax.experimental.pallas import tpu as pltpu


_INV_SQRT2 = 0.7071067811865475


def _spk_fc_kernel(x_ref, w1_ref, b1_ref, w2_ref, b2_ref, o_ref):
    # x_ref : (TB, F) bf16   w1_ref: (F, F) bf16   b1_ref: (1, F) f32
    # w2_ref: (F, E) bf16    b2_ref: (1, E) f32    o_ref : (TB, E) f32

    # Linear 1 on the MXU: bf16 operands, f32 accumulate.
    h = jnp.dot(x_ref[...], w1_ref[...], preferred_element_type=jnp.float32)
    h = h + b1_ref[...]

    # Exact (erf-based) GELU in f32, matching torch.nn.GELU() default.
    h = 0.5 * h * (1.0 + jax.lax.erf(h * _INV_SQRT2))

    # Dropout(p=0.2): identity in eval mode.

    # Linear 2 on the MXU: cast activations back to bf16, f32 accumulate.
    out = jnp.dot(h.astype(w2_ref.dtype), w2_ref[...],
                  preferred_element_type=jnp.float32)
    out = out + b2_ref[...]
    o_ref[...] = out.astype(o_ref.dtype)


def _round_up(n, m):
    return ((n + m - 1) // m) * m


def _pick_batch_tile(B):
    # Large tiles keep MXU rows busy; >=2 grid steps for big batches lets v7x
    # megacore shard the batch across its 2 TensorCores. Small batches run as
    # a single sublane-aligned tile (no per-step pipeline overhead).
    if B >= 1024:
        return 512
    if B >= 512:
        return 256
    if B >= 256:
        return 128
    return max(8, _round_up(B, 8))


@functools.partial(jax.jit, static_argnames=("tb", "mxu_dtype"))
def speaker_encoding_forward(x, w1, b1, w2, b2, *, tb=None, mxu_dtype=jnp.bfloat16):
    B, F = x.shape
    E = w2.shape[1]
    if tb is None:
        tb = _pick_batch_tile(B)

    # MXU operands in bf16 (3-4x faster matmul on v6e/v7x, ~2x on v5e);
    # biases kept in f32 so the bias-add + GELU path stays full precision.
    xm = x.astype(mxu_dtype)
    w1m = w1.astype(mxu_dtype)
    w2m = w2.astype(mxu_dtype)
    b1f = b1.astype(jnp.float32).reshape(1, F)
    b2f = b2.astype(jnp.float32).reshape(1, E)

    # Pad batch up to a tile multiple (zero rows are harmless; sliced off below).
    Bp = _round_up(B, tb)
    if Bp != B:
        xm = jnp.pad(xm, ((0, Bp - B), (0, 0)))

    grid = (Bp // tb,)
    out = pl.pallas_call(
        _spk_fc_kernel,
        out_shape=jax.ShapeDtypeStruct((Bp, E), jnp.float32),
        grid_spec=pltpu.PrefetchScalarGridSpec(
            num_scalar_prefetch=0,
            grid=grid,
            in_specs=[
                pl.BlockSpec((tb, F), lambda i: (i, 0)),   # x tile (batch-tiled)
                # Constant index_map -> Pallas revisits these blocks (no per-step
                # re-DMA); weights stay VMEM-resident across the batch loop.
                pl.BlockSpec((F, F), lambda i: (0, 0)),    # W1 (resident)
                pl.BlockSpec((1, F), lambda i: (0, 0)),    # b1 (resident)
                pl.BlockSpec((F, E), lambda i: (0, 0)),    # W2 (resident)
                pl.BlockSpec((1, E), lambda i: (0, 0)),    # b2 (resident)
            ],
            out_specs=pl.BlockSpec((tb, E), lambda i: (i, 0)),
        ),
        compiler_params=pltpu.CompilerParams(
            dimension_semantics=("parallel",),
        ),
    )(xm, w1m, b1f, w2m, b2f)
    return out[:B] if Bp != B else out


def _reference_f32(x, w1, b1, w2, b2):
    # Pure-f32 reference matching torch module semantics (eval mode).
    h = x.astype(jnp.float32) @ w1.astype(jnp.float32) + b1.reshape(1, -1)
    h = jax.nn.gelu(h, approximate=False)
    return h @ w2.astype(jnp.float32) + b2.reshape(1, -1)


def _reference_bf16(x, w1, b1, w2, b2):
    # Reference mimicking the kernel's bf16-operand / f32-accumulate scheme.
    xm, w1m, w2m = (a.astype(jnp.bfloat16) for a in (x, w1, w2))
    h = jnp.dot(xm, w1m, preferred_element_type=jnp.float32) + b1.reshape(1, -1)
    h = jax.nn.gelu(h, approximate=False)
    return jnp.dot(h.astype(jnp.bfloat16), w2m,
                   preferred_element_type=jnp.float32) + b2.reshape(1, -1)


if __name__ == "__main__":
    # Small, module-consistent shapes: spk_ft_size=256, spk_emb_size=64, batch=8.
    B, F, E = 8, 256, 64
    key = jax.random.PRNGKey(0)
    kx, kw1, kb1, kw2, kb2 = jax.random.split(key, 5)

    x = jax.random.normal(kx, (B, F), dtype=jnp.float32)

    # Deterministic synthetic parameters (uniform init à la torch.nn.Linear).
    lim1 = 1.0 / jnp.sqrt(jnp.float32(F))
    w1 = jax.random.uniform(kw1, (F, F), jnp.float32, -lim1, lim1)
    b1 = jax.random.uniform(kb1, (F,), jnp.float32, -lim1, lim1)
    w2 = jax.random.uniform(kw2, (F, E), jnp.float32, -lim1, lim1)
    b2 = jax.random.uniform(kb2, (E,), jnp.float32, -lim1, lim1)

    out = speaker_encoding_forward(x, w1, b1, w2, b2)
    out = jax.block_until_ready(out)
    assert out.shape == (B, E)

    # Tight check vs a reference using the same bf16-operand / f32-accumulate scheme.
    ref_bf16 = _reference_bf16(x, w1, b1, w2, b2)
    assert jnp.allclose(out, ref_bf16, atol=2e-3, rtol=2e-3), "mismatch vs bf16 reference"

    # Loose check vs the full-f32 module reference (bf16 MXU operands => ~1e-2 error).
    ref_f32 = _reference_f32(x, w1, b1, w2, b2)
    assert jnp.allclose(out, ref_f32, atol=5e-2, rtol=5e-2), "mismatch vs f32 reference"

    # Non-tile-divisible batch path (exercises the padding wrapper).
    x_odd = jax.random.normal(kx, (5, F), dtype=jnp.float32)
    out_odd = jax.block_until_ready(speaker_encoding_forward(x_odd, w1, b1, w2, b2))
    assert out_odd.shape == (5, E)
    ref_odd = _reference_bf16(x_odd, w1, b1, w2, b2)
    assert jnp.allclose(out_odd, ref_odd, atol=2e-3, rtol=2e-3), "mismatch on padded batch"

    print("KERNEL_OK")
</pallas_src>

<mosaic_0001>
module attributes {stable_mosaic.version = 11 : i64} {
  func.func @_spk_fc_kernel(%arg0: i32, %arg1: memref<8x256xbf16, #tpu.memory_space<vmem>>, %arg2: memref<256x256xbf16, #tpu.memory_space<vmem>>, %arg3: memref<1x256xf32, #tpu.memory_space<vmem>>, %arg4: memref<256x64xbf16, #tpu.memory_space<vmem>>, %arg5: memref<1x64xf32, #tpu.memory_space<vmem>>, %arg6: memref<8x64xf32, #tpu.memory_space<vmem>>) attributes {dimension_semantics = [#tpu.dimension_semantics<parallel>], iteration_bounds = array<i64: 1>, scalar_prefetch = 0 : i64, scratch_operands = 0 : i64, tpu.core_type = #tpu.core_type<tc>, window_params = [{transform_indices = @transform_0, window_bounds = array<i64: 8, 256>}, {pipeline_mode = #tpu.pipeline_mode<synchronous>, transform_indices = @transform_1, window_bounds = array<i64: 256, 256>}, {pipeline_mode = #tpu.pipeline_mode<synchronous>, transform_indices = @transform_2, window_bounds = array<i64: 1, 256>}, {pipeline_mode = #tpu.pipeline_mode<synchronous>, transform_indices = @transform_3, window_bounds = array<i64: 256, 64>}, {pipeline_mode = #tpu.pipeline_mode<synchronous>, transform_indices = @transform_4, window_bounds = array<i64: 1, 64>}, {transform_indices = @transform_5, window_bounds = array<i64: 8, 64>}]} {
    %c0 = arith.constant 0 : index
    %c0_0 = arith.constant 0 : index
    %0 = vector.load %arg1[%c0, %c0_0] : memref<8x256xbf16, #tpu.memory_space<vmem>>, vector<8x256xbf16>
    %c0_1 = arith.constant 0 : index
    %c0_2 = arith.constant 0 : index
    %1 = vector.load %arg2[%c0_1, %c0_2] : memref<256x256xbf16, #tpu.memory_space<vmem>>, vector<256x256xbf16>
    %cst = arith.constant dense<0.000000e+00> : vector<8x256xf32>
    %2 = tpu.matmul %0, %1, %cst {dimension_numbers = #tpu.dot_dimension_numbers<[1], [0], [0], [1], [0, 0, 1, 1], [], []>} : vector<8x256xbf16>, vector<256x256xbf16>, vector<8x256xf32> -> vector<8x256xf32>
    %c0_3 = arith.constant 0 : index
    %c0_4 = arith.constant 0 : index
    %3 = vector.load %arg3[%c0_3, %c0_4] : memref<1x256xf32, #tpu.memory_space<vmem>>, vector<1x256xf32>
    %4 = vector.broadcast %3 : vector<1x256xf32> to vector<8x256xf32>
    %5 = arith.addf %2, %4 : vector<8x256xf32>
    %cst_5 = arith.constant 5.000000e-01 : f32
    %6 = vector.broadcast %cst_5 : f32 to vector<8x256xf32>
    %7 = arith.mulf %6, %5 : vector<8x256xf32>
    %cst_6 = arith.constant 0.707106769 : f32
    %8 = vector.broadcast %cst_6 : f32 to vector<8x256xf32>
    %9 = arith.mulf %5, %8 : vector<8x256xf32>
    %10 = math.erf %9 : vector<8x256xf32>
    %cst_7 = arith.constant 1.000000e+00 : f32
    %11 = vector.broadcast %cst_7 : f32 to vector<8x256xf32>
    %12 = arith.addf %11, %10 : vector<8x256xf32>
    %13 = arith.mulf %7, %12 : vector<8x256xf32>
    %14 = arith.truncf %13 : vector<8x256xf32> to vector<8x256xbf16>
    %c0_8 = arith.constant 0 : index
    %c0_9 = arith.constant 0 : index
    %15 = vector.load %arg4[%c0_8, %c0_9] : memref<256x64xbf16, #tpu.memory_space<vmem>>, vector<256x64xbf16>
    %cst_10 = arith.constant dense<0.000000e+00> : vector<8x64xf32>
    %16 = tpu.matmul %14, %15, %cst_10 {dimension_numbers = #tpu.dot_dimension_numbers<[1], [0], [0], [1], [0, 0, 1, 1], [], []>} : vector<8x256xbf16>, vector<256x64xbf16>, vector<8x64xf32> -> vector<8x64xf32>
    %c0_11 = arith.constant 0 : index
    %c0_12 = arith.constant 0 : index
    %17 = vector.load %arg5[%c0_11, %c0_12] : memref<1x64xf32, #tpu.memory_space<vmem>>, vector<1x64xf32>
    %18 = vector.broadcast %17 : vector<1x64xf32> to vector<8x64xf32>
    %19 = arith.addf %16, %18 : vector<8x64xf32>
    %c0_13 = arith.constant 0 : index
    %c0_14 = arith.constant 0 : index
    %20 = vector.load %arg6[%c0_13, %c0_14] : memref<8x64xf32, #tpu.memory_space<vmem>>, vector<8x64xf32>
    tpu.vector_store %arg6[%c0_13, %c0_14], %19 {strides = array<i32>} : memref<8x64xf32, #tpu.memory_space<vmem>>, vector<8x64xf32>,
    return
  }
  func.func @transform_0(%arg0: i32) -> (i32, i32) {
    %c0_i32 = arith.constant 0 : i32
    %c0_i32_0 = arith.constant 0 : i32
    return %arg0, %c0_i32 : i32, i32
  }
  func.func @transform_1(%arg0: i32) -> (i32, i32) {
    %c0_i32 = arith.constant 0 : i32
    %c0_i32_0 = arith.constant 0 : i32
    %c0_i32_1 = arith.constant 0 : i32
    return %c0_i32, %c0_i32_0 : i32, i32
  }
  func.func @transform_2(%arg0: i32) -> (i32, i32) {
    %c0_i32 = arith.constant 0 : i32
    %c0_i32_0 = arith.constant 0 : i32
    %c0_i32_1 = arith.constant 0 : i32
    return %c0_i32, %c0_i32_0 : i32, i32
  }
  func.func @transform_3(%arg0: i32) -> (i32, i32) {
    %c0_i32 = arith.constant 0 : i32
    %c0_i32_0 = arith.constant 0 : i32
    %c0_i32_1 = arith.constant 0 : i32
    return %c0_i32, %c0_i32_0 : i32, i32
  }
  func.func @transform_4(%arg0: i32) -> (i32, i32) {
    %c0_i32 = arith.constant 0 : i32
    %c0_i32_0 = arith.constant 0 : i32
    %c0_i32_1 = arith.constant 0 : i32
    return %c0_i32, %c0_i32_0 : i32, i32
  }
  func.func @transform_5(%arg0: i32) -> (i32, i32) {
    %c0_i32 = arith.constant 0 : i32
    %c0_i32_0 = arith.constant 0 : i32
    return %arg0, %c0_i32 : i32, i32
  }
}

</mosaic_0001>

<bundles_post_ra>
// kernel: speaker_encoding_forward.1
= control target key start
LH: loop header
LB: loop body
LE: loop exit
PB: predicated region body
PF: predicated region fallthrough
CT: control target
= control target key end

     0   :  { %s842_s0 = inlined_call_operand.vmem [shape: bf16[8,256], index: 0, kind: input, shape index: {}]   ;;  %s843_s1 = inlined_call_operand.vmem [shape: bf16[256,256], index: 1, kind: input, shape index: {}]   ;;  %s844_s2 = inlined_call_operand.vmem [shape: f32[1,256], index: 2, kind: input, shape index: {}]   ;;  %s845_s3 = inlined_call_operand.vmem [shape: bf16[256,64], index: 3, kind: input, shape index: {}]   ;;  %s846_s4 = inlined_call_operand.vmem [shape: f32[1,64], index: 4, kind: input, shape index: {}]   ;;  %s847_s5 = inlined_call_operand.hbm [shape: f32[8,64], index: 5, kind: output, shape index: {}]  }
   0x1   :  { %v552_v0 = vld [vmem:[%s843_s1 + $0x4] ss:$8 sps:$4 sm:$0xff]   ;;  %v554_v1 = vld [vmem:[%s843_s1] ss:$8 sps:$4 sm:$0xff]   ;;  %v555_v2 = vld [vmem:[%s843_s1 + $0x14] ss:$8 sps:$4 sm:$0xff]  }
   0x2   :  { %234 = vmatprep.subr.bf16.mxu0 %v552_v0  ;;  %v557_v3 = vld [vmem:[%s843_s1 + $0x10] ss:$8 sps:$4 sm:$0xff]   ;;  %v558_v4 = vld [vmem:[%s843_s1 + $0x24] ss:$8 sps:$4 sm:$0xff]   ;;  %v560_v5 = vld [vmem:[%s843_s1 + $0x20] ss:$8 sps:$4 sm:$0xff]  }
   0x3   :  { %235 = vmatpush1.bf16.msra.mxu0 %v554_v1  ;;  %v561_v6 = vld [vmem:[%s843_s1 + $0x34] ss:$8 sps:$4 sm:$0xff]   ;;  %v563_v7 = vld [vmem:[%s843_s1 + $0x30] ss:$8 sps:$4 sm:$0xff]   ;;  %v564_v8 = vld [vmem:[%s843_s1 + $0x44] ss:$8 sps:$4 sm:$0xff]  }
   0x4   :  { %236 = vmatprep.subr.bf16.mxu0 %v555_v2  ;;  %v566_v9 = vld [vmem:[%s843_s1 + $0x40] ss:$8 sps:$4 sm:$0xff]   ;;  %v567_v10 = vld [vmem:[%s843_s1 + $0x54] ss:$8 sps:$4 sm:$0xff]   ;;  %v569_v11 = vld [vmem:[%s843_s1 + $0x50] ss:$8 sps:$4 sm:$0xff]  }
   0x5   :  { %v570_v12 = vld [vmem:[%s843_s1 + $0x64] ss:$8 sps:$4 sm:$0xff]   ;;  %v572_v13 = vld [vmem:[%s843_s1 + $0x60] ss:$8 sps:$4 sm:$0xff]   ;;  %v573_v15 = vld [vmem:[%s843_s1 + $0x74] ss:$8 sps:$4 sm:$0xff]  }
   0x6   :  { %v22_v14 = vld [vmem:[%s842_s0] sm:$0xff]  ;;  %v604_v19 = vld [vmem:[%s845_s3 + $0x48] sm:$0xff]   ;;  %v575_v20 = vld [vmem:[%s843_s1 + $0x70] ss:$8 sps:$4 sm:$0xff]  }
   0x7   :  { %237 = vmatpush1.bf16.msra.mxu0 %v557_v3  ;;  %v479_v16 = vcombine.high %v22_v14, %v22_v14  ;;  %v602_v17 = vld [vmem:[%s845_s3 + $0x40] sm:$0xff]   ;;  %v605_v21 = vld [vmem:[%s845_s3 + $0x8] sm:$0xff]   ;;  %v579_v24 = vld [vmem:[%s843_s1 + $0x94] ss:$8 sps:$4 sm:$0xff]  }
   0x8   :  { %238 = vmatprep.subr.bf16.mxu0 %v558_v4  ;;  %v603_v18 = vld [vmem:[%s845_s3] sm:$0xff]   ;;  %529 = vmatprep.subr.bf16.mxu1 %v602_v17 }
   0x9   :  { %266 = vmatprep.mubr.bf16.mxu0 %v479_v16  ;;  %v576_v22 = vld [vmem:[%s843_s1 + $0x84] ss:$8 sps:$4 sm:$0xff]   ;;  %530 = vmatpush3.bf16.msra.mxu1 %v603_v18  ;;  %v578_v23 = vld [vmem:[%s843_s1 + $0x80] ss:$8 sps:$4 sm:$0xff]  }
   0xa   :  { %531 = vmatprep.subr.bf16.mxu1 %v604_v19 }
   0xb   :  { %239 = vmatpush1.bf16.msra.mxu0 %v560_v5 }
   0xc   :  { %240 = vmatprep.subr.bf16.mxu0 %v561_v6 }
   0xd   :  { %532 = vmatpush3.bf16.msra.mxu1 %v605_v21 }
   0xf   :  { %241 = vmatpush1.bf16.msra.mxu0 %v563_v7 }
  0x10   :  { %242 = vmatprep.subr.bf16.mxu0 %v564_v8 }
  0x13   :  { %243 = vmatpush1.bf16.msra.mxu0 %v566_v9 }
  0x14   :  { %244 = vmatprep.subr.bf16.mxu0 %v567_v10 }
  0x17   :  { %245 = vmatpush1.bf16.msra.mxu0 %v569_v11 }
  0x18   :  { %246 = vmatprep.subr.bf16.mxu0 %v570_v12 }
  0x1b   :  { %247 = vmatpush1.bf16.msra.mxu0 %v572_v13 }
  0x1c   :  { %248 = vmatprep.subr.bf16.mxu0 %v573_v15 }
  0x1f   :  { %249 = vmatpush1.bf16.msra.mxu0 %v575_v20 }
  0x20   :  { %250 = vmatprep.subr.bf16.mxu0 %v576_v22 }
  0x21   :  { %10 = vsyncpa [#allocation3], 0  ;;  %v581_v25 = vld [vmem:[%s843_s1 + $0x90] ss:$8 sps:$4 sm:$0xff]   ;;  %v582_v26 = vld [vmem:[%s843_s1 + $0xa4] ss:$8 sps:$4 sm:$0xff]   ;;  %v478_v38 = vcombine.low %v22_v14, %v22_v14  ;;  %v57_v51 = vlaneseq }
  0x22   :  { %v584_v27 = vld [vmem:[%s843_s1 + $0xa0] ss:$8 sps:$4 sm:$0xff]   ;;  %v585_v28 = vld [vmem:[%s843_s1 + $0xb4] ss:$8 sps:$4 sm:$0xff]   ;;  %v587_v29 = vld [vmem:[%s843_s1 + $0xb0] ss:$8 sps:$4 sm:$0xff]  }
  0x23   :  { %251 = vmatpush1.bf16.msra.mxu0 %v578_v23  ;;  %v588_v30 = vld [vmem:[%s843_s1 + $0xc4] ss:$8 sps:$4 sm:$0xff]   ;;  %v590_v31 = vld [vmem:[%s843_s1 + $0xc0] ss:$8 sps:$4 sm:$0xff]   ;;  %v591_v32 = vld [vmem:[%s843_s1 + $0xd4] ss:$8 sps:$4 sm:$0xff]  }
  0x24   :  { %252 = vmatprep.subr.bf16.mxu0 %v579_v24  ;;  %v593_v33 = vld [vmem:[%s843_s1 + $0xd0] ss:$8 sps:$4 sm:$0xff]   ;;  %v594_v34 = vld [vmem:[%s843_s1 + $0xe4] ss:$8 sps:$4 sm:$0xff]   ;;  %v596_v35 = vld [vmem:[%s843_s1 + $0xe0] ss:$8 sps:$4 sm:$0xff]  }
  0x25   :  { %v597_v36 = vld [vmem:[%s843_s1 + $0xf4] ss:$8 sps:$4 sm:$0xff]   ;;  %v599_v37 = vld [vmem:[%s843_s1 + $0xf0] ss:$8 sps:$4 sm:$0xff]   ;;  %v610_v43 = vld [vmem:[%s845_s3 + $0x60] sm:$0xff]   ;;  %v58_v52 = vshrl.u32 %v57_v51, 7 }
  0x26   :  { %v606_v39 = vld [vmem:[%s845_s3 + $0x50] sm:$0xff]   ;;  %v608_v41 = vld [vmem:[%s845_s3 + $0x58] sm:$0xff]   ;;  %v611_v44 = vld [vmem:[%s845_s3 + $0x20] sm:$0xff]   ;;  %s646_s14 = smov [#allocation2]   ;;  %vm462_vm0 = vcmask 523264  }
  0x27   :  { %253 = vmatpush1.bf16.msra.mxu0 %v581_v25  ;;  %v607_v40 = vld [vmem:[%s845_s3 + $0x10] sm:$0xff]   ;;  %533 = vmatprep.subr.bf16.mxu1 %v606_v39  ;;  %v609_v42 = vld [vmem:[%s845_s3 + $0x18] sm:$0xff]   ;;  %v612_v45 = vld [vmem:[%s845_s3 + $0x68] sm:$0xff]   ;;  %v59_v53 = vsub.s32 0, %v58_v52  ;;  %v63_v55 = vsub.s32 1, %v58_v52  ;;  %s470_s15 = sshll.u32 %s646_s14, 4  ;;  %s471_s15 = int_to_ptr.vmem [resolvable:$true] %s470_s15 }
  0x28   :  { %254 = vmatprep.subr.bf16.mxu0 %v582_v26  ;;  %534 = vmatpush3.bf16.msra.mxu1 %v607_v40  ;;  %v613_v46 = vld [vmem:[%s845_s3 + $0x28] sm:$0xff]   ;;  %v614_v47 = vld [vmem:[%s845_s3 + $0x70] sm:$0xff]   ;;  %v616_v49 = vld [vmem:[%s845_s3 + $0x78] sm:$0xff]   ;;  %s622_s16 = scalar_lea.vmem %s471_s15, 128  ;;  %p627_p1 = scmp.lt.s32.totalorder %s471_s15, %s471_s15 }
  0x29   :  { %535 = vmatprep.subr.bf16.mxu1 %v608_v41  ;;  %v615_v48 = vld [vmem:[%s845_s3 + $0x30] sm:$0xff]   ;;  %v617_v50 = vld [vmem:[%s845_s3 + $0x38] sm:$0xff]   ;;  %v55_v54 = vld [vmem:[%s844_s2] sm:$0x3]  ;;  %p623_p0 = scmp.ne.s32.totalorder %s471_s15, %s622_s16  ;;  %p628_p2 = scmp.lt.s32.totalorder %s622_s16, %s622_s16 }
  0x2a   :  { %v60_v56 = vrot.slane %v55_v54, %v59_v53  ;;  %v64_v57 = vrot.slane %v55_v54, %v63_v55  ;;  %v512_v13 = vld [vmem:[%s846_s4] ss:$0 sm:$0xff] }
  0x2b   :  { %255 = vmatpush1.bf16.msra.mxu0 %v584_v27  ;;  %p629_p3 = por %p628_p2, %p627_p1 }
  0x2c   :  { %256 = vmatprep.subr.bf16.mxu0 %v585_v28  ;;  %536 = vmatpush3.bf16.msra.mxu1 %v609_v42 }
  0x2d   :  { %537 = vmatprep.subr.bf16.mxu1 %v610_v43  ;;  %p630_p4 = pnand %p629_p3, %p623_p0 }
  0x2f   :  { %257 = vmatpush1.bf16.msra.mxu0 %v587_v29 }
  0x30   :  { %258 = vmatprep.subr.bf16.mxu0 %v588_v30  ;;  %538 = vmatpush3.bf16.msra.mxu1 %v611_v44 }
  0x31   :  { %539 = vmatprep.subr.bf16.mxu1 %v612_v45 }
  0x33   :  { %259 = vmatpush1.bf16.msra.mxu0 %v590_v31 }
  0x34   :  { %260 = vmatprep.subr.bf16.mxu0 %v591_v32  ;;  %540 = vmatpush3.bf16.msra.mxu1 %v613_v46 }
  0x35   :  { %541 = vmatprep.subr.bf16.mxu1 %v614_v47 }
  0x37   :  { %261 = vmatpush1.bf16.msra.mxu0 %v593_v33 }
  0x38   :  { %262 = vmatprep.subr.bf16.mxu0 %v594_v34  ;;  %542 = vmatpush3.bf16.msra.mxu1 %v615_v48 }
  0x39   :  { %543 = vmatprep.subr.bf16.mxu1 %v616_v49 }
  0x3b   :  { %263 = vmatpush1.bf16.msra.mxu0 %v596_v35 }
  0x3c   :  { %264 = vmatprep.subr.bf16.mxu0 %v597_v36  ;;  %544 = vmatpush3.bf16.msra.mxu1 %v617_v50 }
  0x3f   :  { %265 = vmatpush1.bf16.msra.mxu0 %v599_v37 }
  0x42   :  { %267 = vmatmul.mubr.bf16.vlgmr.msra.gmra.mrb[0].mxu0 %v478_v38 }
 0x115   :  { %v268_v58 = vpop.f32.mrb[0].mxu0 }
 0x116   :  { %v269_v59 = vadd.f32 %v268_v58, %v60_v56  ;;  %v270_v60 = vpop.f32.mrb[1].mxu0 }
 0x117   :  { %v271_v61 = vadd.f32 %v270_v60, %v64_v57  ;;  %v272_v62 = vpop.f32.mrb[2].mxu0 }
 0x118   :  { %v277_v63 = vmul.f32 0.70710677, %v269_v59  ;;  %v273_v0 = vpop.f32.mrb[3].mxu0  ;;  %v275_v4 = vmul.f32 0.5, %v269_v59 }
 0x119   :  { %v278_v1 = vmul.f32 0.70710677, %v271_v61  ;;  %v276_v6 = vmul.f32 0.5, %v271_v61 }
 0x11a   :  { %618 = verf.f32 %v277_v63 }
 0x11b   :  { %620 = verf.f32 %v278_v1 }
 0x124   :  { %v619_v2 = vpop.eup %618 }
 0x125   :  { %v621_v3 = vpop.eup %620  ;;  %v281_v5 = vadd.f32 1.0, %v619_v2 }
 0x126   :  { %v282_v7 = vadd.f32 1.0, %v621_v3 }
 0x127   :  { %v283_v8 = vmul.f32 %v281_v5, %v275_v4 }
 0x128   :  { %v284_v9 = vmul.f32 %v282_v7, %v276_v6 }
 0x129   :  { %v285_v11 = vpack.c.bf16 %v283_v8, %v283_v8 }
 0x12a   :  { %v286_v10 = vpack.c.bf16 %v284_v9, %v284_v9 }
 0x12c   :  { %454 = vmatprep.mubr.bf16.mxu1 %v286_v10 }
 0x12d   :  { %455 = vmatmul.mubr.bf16.vlgmr.msra.gmra.mrb[0].mxu1 %v285_v11 }
 0x200   :  { %v545_v12 = vpop.f32.mrb[0].mxu1 }
 0x201   :  { %v546_v14 = vpop.f32.mrb[1].mxu1 }
 0x202   :  { %v547_v15 = vadd.f32 %v546_v14, %v545_v12  ;;  %v548_v16 = vpop.f32.mrb[2].mxu1 }
 0x203   :  { %v549_v17 = vpop.f32.mrb[3].mxu1 }
 0x204   :  { %v457_v18 = vadd.f32 %v547_v15, %v512_v13 }
 0x206   :  { %463 = vst.msk [vmem:[#allocation2] sm:$0xff] %vm462_vm0, %v457_v18 }
 0x207   :  { %633 = shalt.err (!%p630_p4)
}
 0x208   :  { %s634_s4 = scalar_lea.hbm %s847_s5, 128 }
 0x209   :  { %p635_p5 = scmp.ne.s32.totalorder %s847_s5, %s634_s4  ;;  %p638_p6 = scmp.lt.u32.totalorder %s634_s4, %s847_s5 }
 0x20b   :  { %p640_p7 = pnand %p638_p6, %p635_p5 }
 0x20d   :  { %643 = shalt.err (!%p640_p7)
}
 0x20e   :  { %473 = dma.vmem_to_hbm [thread:$0]  %s471_s15, 128, %s847_s5, [#allocation3]  }
 0x20f   :  { %644 = dma.done.wait [#allocation3], 128  }
 0x210   :  { %645 = vsyncadd [#allocation3], 4294967168 }
 0x211   :  { %477 = vsyncpa [#allocation3], 1 }

</bundles_post_ra>
